<compile_context>
chip_gen: v6e
topology: v6e:2x2x1
jax: 0.10.0
libtpu: 0.0.40
codegen_flags: <defaults>
</compile_context>

<pallas_src>
import jax
import jax.numpy as jnp
from jax.experimental import pallas as pl


def _attention_kernel(mem_ref, mask_ref, query_ref, wm_ref, wq_ref, v_ref,
                      weights_ref, context_ref):
    B, N, M = mem_ref.shape
    A = wq_ref.shape[1]
    f32 = jnp.float32

    mem = mem_ref[...]                                      # (B, N, M)
    mask = mask_ref[...]                                    # (B, N)

    # St * Ws : (B, Q) @ (Q, A) -> (B, A)                   [MXU]
    tq = jnp.dot(query_ref[...], wq_ref[...], preferred_element_type=f32)

    # Hi * Wh : batched (B, N, M) x (M, A) -> (B, N, A)     [MXU]
    wm_b = jnp.broadcast_to(wm_ref[...][None, :, :], (B, M, A))
    mem_t = jnp.einsum('bnm,bma->bna', mem, wm_b, preferred_element_type=f32)

    # tanh(Hi*Wh + St*Ws)                                   [EUP]
    e = jnp.tanh(mem_t + tq[:, None, :])                    # (B, N, A)

    # (...) * v : project attn_dim down per cell            [VPU mul + lane reduce]
    v_row = v_ref[...].reshape(1, 1, A)
    logits = jnp.sum(e * v_row, axis=-1)                    # (B, N)

    # Mask handling (matches the torch code): -inf where mask == 0, but rows with
    # no valid cells get suppress == 0 so the softmax stays finite; their weights
    # are zeroed out afterwards.
    has_cell = jnp.max(mask, axis=-1, keepdims=True) > 0.0  # (B, 1)
    neg_inf = jnp.float32(-jnp.inf)
    suppress = jnp.where(mask == 0.0, neg_inf, 0.0)
    suppress = jnp.where(has_cell, suppress, 0.0)
    logits = logits + suppress

    # softmax over cells (lane axis)
    m = jnp.max(logits, axis=-1, keepdims=True)
    p = jnp.exp(logits - m)
    denom = jnp.sum(p, axis=-1, keepdims=True)
    weights = p / denom
    weights = jnp.where(has_cell, weights, 0.0)             # empty rows -> all zeros
    weights_ref[...] = weights.astype(weights_ref.dtype)

    # context = weights (B,1,N) @ memory_values (B,N,M) -> (B, M)   [MXU]
    ctx = jnp.einsum('bqn,bnm->bqm', weights[:, None, :], mem,
                     preferred_element_type=f32)
    context_ref[...] = ctx.reshape(B, M).astype(context_ref.dtype)


def attention_forward(memory_values, mask, query, memory_transform,
                      query_transform, v_transform):
    """Pallas implementation of Attention.forward.

    Args:
      memory_values:    (B, N, M) f32  -- memory_cells.values
      mask:             (B, N)    f32  -- memory_cells.mask (1.0 valid / 0.0 pad)
      query:            (B, Q)    f32
      memory_transform: (M, A)    f32  -- Wh
      query_transform:  (Q, A)    f32  -- Ws
      v_transform:      (A, 1)    f32  -- v

    Returns:
      (weights, context): ((B, N), (B, M)) float32.
    """
    B, N, M = memory_values.shape
    Q = query.shape[1]
    A = memory_transform.shape[1]
    # Present v as a lane-dense (1, A) row inside the kernel.
    v_row = v_transform.reshape(1, A)

    out_shapes = (
        jax.ShapeDtypeStruct((B, N), jnp.float32),
        jax.ShapeDtypeStruct((B, M), jnp.float32),
    )
    # Small problem: one grid step, full-array blocks (block shape == array shape
    # waives the (8,128) divisibility rule); everything fits VMEM comfortably.
    # TODO(synk): for large B/N, tile the grid over batch ("parallel") and size
    #             blocks against the 32 MiB scoped VMEM budget (v7x: 64 MiB phys).
    weights, context = pl.pallas_call(
        _attention_kernel,
        out_shape=out_shapes,
        grid=(),
        in_specs=[
            pl.BlockSpec((B, N, M), lambda: (0, 0, 0)),
            pl.BlockSpec((B, N), lambda: (0, 0)),
            pl.BlockSpec((B, Q), lambda: (0, 0)),
            pl.BlockSpec((M, A), lambda: (0, 0)),
            pl.BlockSpec((Q, A), lambda: (0, 0)),
            pl.BlockSpec((1, A), lambda: (0, 0)),
        ],
        out_specs=(
            pl.BlockSpec((B, N), lambda: (0, 0)),
            pl.BlockSpec((B, M), lambda: (0, 0)),
        ),
    )(memory_values, mask, query, memory_transform, query_transform, v_row)
    return weights, context


def attention_reference(memory_values, mask, query, wm, wq, v):
    """Pure-JAX reference mirroring the PyTorch forward."""
    tq = query @ wq
    e = jnp.tanh(jnp.einsum('bnm,ma->bna', memory_values, wm) + tq[:, None, :])
    logits = jnp.einsum('bna,ak->bnk', e, v)[..., 0]
    no_cells = jnp.prod(1.0 - mask, axis=1, keepdims=True)
    suppress = jnp.where(mask == 0.0, -jnp.inf, 0.0)
    suppress = jnp.where(no_cells == 1.0, 0.0, suppress)
    weights = jax.nn.softmax(logits + suppress, axis=-1)
    weights = jnp.where(no_cells == 1.0, 0.0, weights)
    context = jnp.einsum('bn,bnm->bm', weights, memory_values)
    return weights, context


if __name__ == "__main__":
    memory_dim, query_dim, attn_dim = 32, 32, 16
    batch, num_cells = 2, 8

    key = jax.random.PRNGKey(0)
    k_mem, k_query, k_wm, k_wq, k_v = jax.random.split(key, 5)

    memory_values = jax.random.normal(
        k_mem, (batch, num_cells, memory_dim), jnp.float32)
    query = jax.random.normal(k_query, (batch, query_dim), jnp.float32)

    def init_w(k, in_dim, out_dim):
        stdv = 1.0 / (in_dim ** 0.5)
        return jax.random.uniform(k, (in_dim, out_dim), jnp.float32, -stdv, stdv)

    memory_transform = init_w(k_wm, memory_dim, attn_dim)   # Wh
    query_transform = init_w(k_wq, query_dim, attn_dim)     # Ws
    v_transform = init_w(k_v, attn_dim, 1)                  # v

    # Row 0: a few padded cells.  Row 1: fully padded (exercises the no_cells path).
    mask = jnp.array([[1, 1, 0, 1, 0, 1, 1, 0],
                      [0, 0, 0, 0, 0, 0, 0, 0]], dtype=jnp.float32)

    weights, context = attention_forward(
        memory_values, mask, query, memory_transform, query_transform, v_transform)
    jax.block_until_ready((weights, context))

    w_ref, c_ref = attention_reference(
        memory_values, mask, query, memory_transform, query_transform, v_transform)

    assert weights.shape == (batch, num_cells) and weights.dtype == jnp.float32
    assert context.shape == (batch, memory_dim) and context.dtype == jnp.float32
    # Masked cells get (essentially) zero weight.
    assert float(jnp.max(weights[0] * (mask[0] == 0.0))) <= 1e-6
    # Fully-masked row produces all-zero weights and context.
    assert bool(jnp.all(weights[1] == 0.0)) and bool(jnp.all(context[1] == 0.0))
    # Row with valid cells is a proper distribution.
    assert abs(float(jnp.sum(weights[0])) - 1.0) < 1e-4
    # Matches the pure-JAX reference (loose tol covers MXU f32 pass-count differences).
    assert bool(jnp.allclose(weights, w_ref, atol=2e-2, rtol=2e-2))
    assert bool(jnp.allclose(context, c_ref, atol=2e-2, rtol=2e-2))

    print("KERNEL_OK")
</pallas_src>

<mosaic_0001>
module attributes {stable_mosaic.version = 11 : i64} {
  func.func @_attention_kernel(%arg0: memref<2x8x32xf32, #tpu.memory_space<vmem>>, %arg1: memref<2x8xf32, #tpu.memory_space<vmem>>, %arg2: memref<2x32xf32, #tpu.memory_space<vmem>>, %arg3: memref<32x16xf32, #tpu.memory_space<vmem>>, %arg4: memref<32x16xf32, #tpu.memory_space<vmem>>, %arg5: memref<1x16xf32, #tpu.memory_space<vmem>>, %arg6: memref<2x8xf32, #tpu.memory_space<vmem>>, %arg7: memref<2x32xf32, #tpu.memory_space<vmem>>) attributes {dimension_semantics = [], scalar_prefetch = 0 : i64, scratch_operands = 0 : i64, tpu.core_type = #tpu.core_type<tc>} {
    %c0 = arith.constant 0 : index
    %c0_0 = arith.constant 0 : index
    %c0_1 = arith.constant 0 : index
    %0 = vector.load %arg0[%c0, %c0_0, %c0_1] : memref<2x8x32xf32, #tpu.memory_space<vmem>>, vector<2x8x32xf32>
    %c0_2 = arith.constant 0 : index
    %c0_3 = arith.constant 0 : index
    %1 = vector.load %arg1[%c0_2, %c0_3] : memref<2x8xf32, #tpu.memory_space<vmem>>, vector<2x8xf32>
    %c0_4 = arith.constant 0 : index
    %c0_5 = arith.constant 0 : index
    %2 = vector.load %arg2[%c0_4, %c0_5] : memref<2x32xf32, #tpu.memory_space<vmem>>, vector<2x32xf32>
    %c0_6 = arith.constant 0 : index
    %c0_7 = arith.constant 0 : index
    %3 = vector.load %arg4[%c0_6, %c0_7] : memref<32x16xf32, #tpu.memory_space<vmem>>, vector<32x16xf32>
    %cst = arith.constant dense<0.000000e+00> : vector<2x16xf32>
    %4 = tpu.matmul %2, %3, %cst {dimension_numbers = #tpu.dot_dimension_numbers<[1], [0], [0], [1], [0, 0, 1, 1], [], []>} : vector<2x32xf32>, vector<32x16xf32>, vector<2x16xf32> -> vector<2x16xf32>
    %c0_8 = arith.constant 0 : index
    %c0_9 = arith.constant 0 : index
    %5 = vector.load %arg3[%c0_8, %c0_9] : memref<32x16xf32, #tpu.memory_space<vmem>>, vector<32x16xf32>
    %6 = vector.shape_cast %5 : vector<32x16xf32> to vector<1x32x16xf32>
    %7 = vector.shape_cast %6 : vector<1x32x16xf32> to vector<1x32x16xf32>
    %8 = vector.broadcast %7 : vector<1x32x16xf32> to vector<2x32x16xf32>
    "tpu.trace_start"() <{level = 10 : i32, message = "bnm,bma->bna"}> : () -> ()
    %cst_10 = arith.constant dense<0.000000e+00> : vector<2x8x16xf32>
    %9 = tpu.matmul %0, %8, %cst_10 {dimension_numbers = #tpu.dot_dimension_numbers<[2], [1], [1], [2], [0, 0, 0, 1, 1, 2], [0], [0]>} : vector<2x8x32xf32>, vector<2x32x16xf32>, vector<2x8x16xf32> -> vector<2x8x16xf32>
    "tpu.trace_stop"() : () -> ()
    %10 = vector.shape_cast %4 : vector<2x16xf32> to vector<2x1x16xf32>
    %11 = vector.broadcast %10 : vector<2x1x16xf32> to vector<2x8x16xf32>
    %12 = arith.addf %9, %11 : vector<2x8x16xf32>
    %13 = math.tanh %12 : vector<2x8x16xf32>
    %c0_11 = arith.constant 0 : index
    %c0_12 = arith.constant 0 : index
    %14 = vector.load %arg5[%c0_11, %c0_12] : memref<1x16xf32, #tpu.memory_space<vmem>>, vector<1x16xf32>
    %15 = vector.shape_cast %14 : vector<1x16xf32> to vector<1x1x16xf32>
    %16 = vector.broadcast %15 : vector<1x1x16xf32> to vector<2x8x16xf32>
    %17 = arith.mulf %13, %16 : vector<2x8x16xf32>
    %cst_13 = arith.constant dense<0.000000e+00> : vector<2x8xf32>
    %18 = vector.multi_reduction <add>, %17, %cst_13 [2] : vector<2x8x16xf32> to vector<2x8xf32>
    %cst_14 = arith.constant dense<0xFF800000> : vector<2xf32>
    %19 = vector.multi_reduction <maximumf>, %1, %cst_14 [1] : vector<2x8xf32> to vector<2xf32>
    %20 = vector.shape_cast %19 : vector<2xf32> to vector<2x1xf32>
    %cst_15 = arith.constant 0.000000e+00 : f32
    %21 = vector.broadcast %cst_15 : f32 to vector<2x1xf32>
    %22 = arith.cmpf ogt, %20, %21 : vector<2x1xf32>
    %cst_16 = arith.constant 0.000000e+00 : f32
    %23 = vector.broadcast %cst_16 : f32 to vector<2x8xf32>
    %24 = arith.cmpf oeq, %1, %23 : vector<2x8xf32>
    %cst_17 = arith.constant 0xFF800000 : f32
    %cst_18 = arith.constant 0.000000e+00 : f32
    %25 = vector.broadcast %cst_17 : f32 to vector<2x8xf32>
    %26 = vector.broadcast %cst_18 : f32 to vector<2x8xf32>
    %27 = arith.select %24, %25, %26 : vector<2x8xi1>, vector<2x8xf32>
    %cst_19 = arith.constant 0.000000e+00 : f32
    %28 = vector.shape_cast %22 : vector<2x1xi1> to vector<2x1xi1>
    %29 = vector.broadcast %28 : vector<2x1xi1> to vector<2x8xi1>
    %30 = vector.broadcast %cst_19 : f32 to vector<2x8xf32>
    %31 = arith.select %29, %27, %30 : vector<2x8xi1>, vector<2x8xf32>
    %32 = arith.addf %18, %31 : vector<2x8xf32>
    %cst_20 = arith.constant dense<0xFF800000> : vector<2xf32>
    %33 = vector.multi_reduction <maximumf>, %32, %cst_20 [1] : vector<2x8xf32> to vector<2xf32>
    %34 = vector.shape_cast %33 : vector<2xf32> to vector<2x1xf32>
    %35 = vector.broadcast %34 : vector<2x1xf32> to vector<2x8xf32>
    %36 = arith.subf %32, %35 : vector<2x8xf32>
    %37 = math.exp %36 : vector<2x8xf32>
    %cst_21 = arith.constant dense<0.000000e+00> : vector<2xf32>
    %38 = vector.multi_reduction <add>, %37, %cst_21 [1] : vector<2x8xf32> to vector<2xf32>
    %39 = vector.shape_cast %38 : vector<2xf32> to vector<2x1xf32>
    %40 = vector.broadcast %39 : vector<2x1xf32> to vector<2x8xf32>
    %41 = arith.divf %37, %40 : vector<2x8xf32>
    %cst_22 = arith.constant 0.000000e+00 : f32
    %42 = vector.shape_cast %22 : vector<2x1xi1> to vector<2x1xi1>
    %43 = vector.broadcast %42 : vector<2x1xi1> to vector<2x8xi1>
    %44 = vector.broadcast %cst_22 : f32 to vector<2x8xf32>
    %45 = arith.select %43, %41, %44 : vector<2x8xi1>, vector<2x8xf32>
    %c0_23 = arith.constant 0 : index
    %c0_24 = arith.constant 0 : index
    %46 = vector.load %arg6[%c0_23, %c0_24] : memref<2x8xf32, #tpu.memory_space<vmem>>, vector<2x8xf32>
    tpu.vector_store %arg6[%c0_23, %c0_24], %45 {strides = array<i32>} : memref<2x8xf32, #tpu.memory_space<vmem>>, vector<2x8xf32>,
    %47 = vector.shape_cast %45 : vector<2x8xf32> to vector<2x1x8xf32>
    "tpu.trace_start"() <{level = 10 : i32, message = "bqn,bnm->bqm"}> : () -> ()
    %cst_25 = arith.constant dense<0.000000e+00> : vector<2x1x32xf32>
    %48 = tpu.matmul %47, %0, %cst_25 {dimension_numbers = #tpu.dot_dimension_numbers<[2], [1], [1], [2], [0, 0, 0, 1, 1, 2], [0], [0]>} : vector<2x1x8xf32>, vector<2x8x32xf32>, vector<2x1x32xf32> -> vector<2x1x32xf32>
    "tpu.trace_stop"() : () -> ()
    %49 = vector.shape_cast %48 : vector<2x1x32xf32> to vector<2x32xf32>
    %c0_26 = arith.constant 0 : index
    %c0_27 = arith.constant 0 : index
    %50 = vector.load %arg7[%c0_26, %c0_27] : memref<2x32xf32, #tpu.memory_space<vmem>>, vector<2x32xf32>
    tpu.vector_store %arg7[%c0_26, %c0_27], %49 {strides = array<i32>} : memref<2x32xf32, #tpu.memory_space<vmem>>, vector<2x32xf32>,
    return
  }
}

</mosaic_0001>

<bundles_post_ra>
// kernel: tpu_custom_call.1
= control target key start
LH: loop header
LB: loop body
LE: loop exit
PB: predicated region body
PF: predicated region fallthrough
CT: control target
= control target key end

     0   :  { %13 = vsyncpa [#allocation3], 0  ;;  %v771_v1 = vmov 0.0   ;;  %vm772_vm0 = vmmov 0   ;;  %s924_s0 = inlined_call_operand.vmem [shape: f32[2,8,32], index: 0, kind: input, shape index: {}]   ;;  %s925_s1 = inlined_call_operand.vmem [shape: f32[2,8], index: 1, kind: input, shape index: {}]   ;;  %s926_s2 = inlined_call_operand.vmem [shape: f32[2,32], index: 2, kind: input, shape index: {}]   ;;  %s927_s3 = inlined_call_operand.vmem [shape: f32[32,16], index: 3, kind: input, shape index: {}]   ;;  %s928_s4 = inlined_call_operand.vmem [shape: f32[32,16], index: 4, kind: input, shape index: {}]   ;;  %s929_s5 = inlined_call_operand.vmem [shape: f32[1,16], index: 5, kind: input, shape index: {}]   ;;  %s930_s6 = inlined_call_operand.hbm [shape: f32[2,8], index: 6, kind: output, shape index: {0}]   ;;  %s931_s7 = inlined_call_operand.hbm [shape: f32[2,32], index: 7, kind: output, shape index: {1}]  }
   0x1   :  { %v34_v0 = vld [vmem:[%s928_s4 + $0x18] sm:$0xff]  ;;  %664 = vmatprep.subr.mxu0 %v771_v1  ;;  %v33_v2 = vld [vmem:[%s928_s4 + $0x10] sm:$0xff]  ;;  %675 = vmatprep.subr.mxu1 %v771_v1  ;;  %v32_v5 = vld [vmem:[%s928_s4 + $0x8] sm:$0xff] }
   0x2   :  { %v112_v3 = vld [vmem:[%s927_s3 + $0x18] sm:$0xff]  ;;  %665 = vmatpush3.msra.mxu0 %v34_v0  ;;  %672 = vmatprep.mubr.msk.f32.mxu0 %vm772_vm0, %v771_v1  ;;  %v111_v4 = vld [vmem:[%s927_s3 + $0x10] sm:$0xff]  ;;  %v110_v6 = vld [vmem:[%s927_s3 + $0x8] sm:$0xff] }
   0x3   :  { %666 = vmatprep.subr.mxu0 %v771_v1  ;;  %676 = vmatpush3.msra.mxu1 %v112_v3 }
   0x4   :  { %667 = vmatpush3.msra.mxu0 %v33_v2  ;;  %677 = vmatprep.subr.mxu1 %v771_v1 }
   0x5   :  { %14 = vsyncpa [#allocation5], 0  ;;  %668 = vmatprep.subr.mxu0 %v771_v1  ;;  %v31_v7 = vld [vmem:[%s928_s4] sm:$0xff]  ;;  %678 = vmatpush3.msra.mxu1 %v111_v4  ;;  %vm35_vm1 = vcmask 261120   ;;  %vm310_vm2 = vcmask 58368   ;;  %v873_v13 = vld [vmem:[%s924_s0 + $0x8] sm:$0xff]  ;;  %v117_v16 = vlaneseq }
   0x6   :  { %669 = vmatpush3.msra.mxu0 %v32_v5  ;;  %v30_v8 = vld [vmem:[%s926_s2] sm:$0x3]  ;;  %679 = vmatprep.subr.mxu1 %v771_v1  ;;  %v773_v14 = vmov 1966171168   ;;  %vm303_vm3 = vcmask 130048   ;;  %v774_v47 = vmov 0  }
   0x7   :  { %670 = vmatprep.subr.mxu0 %v771_v1  ;;  %680 = vmatpush3.msra.mxu1 %v110_v6  ;;  %v109_v9 = vld [vmem:[%s927_s3] sm:$0xff]  ;;  %v115_v15 = vunpack.c.l.s4 %v773_v14  ;;  %v118_v18 = vshrl.u32 %v117_v16, 7  ;;  %v348_v55 = vand.u32 127, %v117_v16  ;;  %vm357_vm6 = vcmask 1041409  }
   0x8   :  { %671 = vmatpush3.msra.mxu0 %v31_v7  ;;  %681 = vmatprep.subr.mxu1 %v771_v1  ;;  %v29_v10 = vld [vmem:[%s925_s1] sm:$0x3]  ;;  %vm459_vm7 = vcmask 64512  }
   0x9   :  { %673 = vmatmul.mubr.msk.f32.vlgmr.msra.gmra.mxu0 %vm35_vm1, %v30_v8  ;;  %686 = vmatprep.subr.mxu0 %v771_v1  ;;  %v27_v11 = vld [vmem:[%s924_s0] sm:$0xff]  ;;  %v311_v12 = vsel %vm310_vm2, %v29_v10, -inf  ;;  %v116_v17 = vunpack.c.0.s8 %v115_v15  ;;  %v885_v22 = vsub.s32 0, %v118_v18  ;;  %vm315_vm4 = vcmp.eq.f32.partialorder %v29_v10, 0.0 }
   0xa   :  { %687 = vmatpush3.msra.mxu0 %v112_v3  ;;  %682 = vmatpush3.msra.mxu1 %v109_v9  ;;  %v642_v35 = vld [vmem:[%s929_s5] ss:$0 sm:$0xff]  ;;  %v316_v43 = vsel %vm315_vm4, -inf, %v771_v1  ;;  %v330_v45 = vsub.s32 1, %v118_v18  ;;  %v351_v57 = vsub.s32 %v348_v55, %v118_v18  ;;  %s775_s5 = smov [#allocation2]  }
   0xb   :  { %688 = vmatprep.subr.mxu0 %v771_v1  ;;  %683 = vmatprep.mubr.msk.f32.mxu1 %vm772_vm0, %v771_v1  ;;  %v882_v19 = vsub.s32 %v116_v17, %v118_v18  ;;  %s617_s22 = sshll.u32 %s775_s5, 4  ;;  %s618_s22 = int_to_ptr.vmem [resolvable:$true] %s617_s22 }
   0xc   :  { %689 = vmatpush3.msra.mxu0 %v111_v4  ;;  %684 = vmatmul.mubr.msk.f32.vlgmr.msra.gmra.mxu1 %vm35_vm1, %v27_v11  ;;  %s727_s23 = scalar_lea.vmem %s618_s22, 32  ;;  %p732_p1 = scmp.lt.s32.totalorder %s618_s22, %s618_s22 }
   0xd   :  { %690 = vmatprep.subr.mxu0 %v771_v1  ;;  %694 = vmatprep.mubr.msk.f32.mxu0 %vm772_vm0, %v771_v1  ;;  %p728_p0 = scmp.ne.s32.totalorder %s618_s22, %s727_s23  ;;  %p733_p2 = scmp.lt.s32.totalorder %s727_s23, %s727_s23 }
   0xe   :  { %691 = vmatpush3.msra.mxu0 %v110_v6  ;;  %312 = vmax.xlane.f32.xlu0 %v311_v12 }
   0xf   :  { %692 = vmatprep.subr.mxu0 %v771_v1  ;;  %697 = vmatprep.subr.mxu1 %v771_v1  ;;  %p734_p3 = por %p733_p2, %p732_p1 }
  0x10   :  { %693 = vmatpush3.msra.mxu0 %v109_v9  ;;  %698 = vmatpush3.msra.mxu1 %v27_v11 }
  0x11   :  { %695 = vmatmul.mubr.msk.f32.vlgmr.msra.gmra.mxu0 %vm35_vm1, %v873_v13  ;;  %699 = vmatprep.mubr.msk.f32.mxu1 %vm772_vm0, %v771_v1  ;;  %p735_p4 = pnand %p734_p3, %p728_p0 }
  0x12   :  { %702 = vmatprep.subr.mxu1 %v771_v1  ;;  %713 = vset.pattern.permute.xlu1 %v774_v47 }
  0x13   :  { %714 = vset.pattern.permute.xlu0 %v774_v47 }
  0x97   :  { %v894_v42 = vpop.xlane.xlu0 %312 }
  0x98   :  { %vm314_vm5 = vcmp.gt.f32.partialorder %v894_v42, 0.0 }
  0x99   :  { %v319_v44 = vsel %vm314_vm5, %v316_v43, 0.0 }
  0x9a   :  { %v324_v46 = vrot.slane %v319_v44, %v885_v22  ;;  %v331_v48 = vrot.slane %v319_v44, %v330_v45 }
  0xc9   :  { %v105_v20 = vpop.f32.mrf.mxu0 }
  0xca   :  { %v120_v21 = vrot.slane %v105_v20, %v882_v19 }
  0xcb   :  { %v674_v23 = vpop.f32.mrf.mxu0 }
  0xcc   :  { %v121_v24 = vcombine.high %v120_v21, %v120_v21  ;;  %v128_v25 = vrot.slane %v120_v21, %v882_v19  ;;  %v215_v26 = vpop.f32.mrf.mxu1 }
  0xce   :  { %v139_v27 = vrot.slane %v128_v25, %v885_v22  ;;  %v135_v28 = vrot.slane %v121_v24, %v882_v19  ;;  %v685_v29 = vpop.f32.mrf.mxu1 }
  0xd0   :  { %v216_v30 = vadd.f32 %v215_v26, %v139_v27  ;;  %v143_v31 = vrot.slane %v135_v28, %v885_v22 }
  0xd1   :  { %v288_v32 = vpop.f32.mrf.mxu0 }
  0xd2   :  { %715 = vtanh.f32 %v216_v30  ;;  %v289_v33 = vadd.f32 %v288_v32, %v143_v31 }
  0xd3   :  { %v696_v34 = vpop.f32.mrf.mxu0 }
  0xd4   :  { %717 = vtanh.f32 %v289_v33 }
  0xdf   :  { %v716_v36 = vpop.eup %715 }
  0xe0   :  { %v301_v37 = vmul.f32 %v716_v36, %v642_v35 }
  0xe1   :  { %v718_v38 = vpop.eup %717 }
  0xe2   :  { %v304_v39 = vsel %vm303_vm3, %v301_v37, 0.0  ;;  %v302_v40 = vmul.f32 %v718_v38, %v642_v35 }
  0xe3   :  { %305 = vadd.xlane.f32.xlu0 %v304_v39 }
  0xe4   :  { %v307_v41 = vsel %vm303_vm3, %v302_v40, 0.0 }
  0xe5   :  { %308 = vadd.xlane.f32.xlu1 %v307_v41 }
  0xf6   :  { %326 = vbcast.lane.b32.xlu1 %v324_v46, 256 }
  0xf9   :  { %333 = vbcast.lane.b32.xlu0 %v331_v48, 256 }
 0x16c   :  { %v306_v49 = vpop.xlane.xlu0 %305 }
 0x16e   :  { %v309_v50 = vpop.xlane.xlu1 %308 }
 0x170   :  { %v334_v53 = vpop.permute.xlu0 %333 }
 0x171   :  { %v338_v54 = vadd.f32 %v334_v53, %v309_v50 }
 0x172   :  { %v327_v51 = vpop.permute.xlu1 %326 }
 0x173   :  { %v337_v52 = vadd.f32 %v327_v51, %v306_v49 }
 0x175   :  { %342 = vperm.xlu1 %713, %v337_v52  }
 0x179   :  { %345 = vperm.xlu1 %713, %v338_v54  }
 0x1f0   :  { %v343_v56 = vpop.permute.xlu1 %342 }
 0x1f1   :  { %v352_v59 = vrot.slane %v343_v56, %v351_v57 }
 0x1f4   :  { %v346_v58 = vpop.permute.xlu1 %345 }
 0x1f5   :  { %v356_v60 = vrot.slane %v346_v58, %v351_v57 }
 0x1f7   :  { %v358_v61 = vsel %vm357_vm6, %v356_v60, %v352_v59 }
 0x1f8   :  { %v360_v62 = vsel %vm310_vm2, %v358_v61, -inf }
 0x1f9   :  { %361 = vmax.xlane.f32.xlu1 %v360_v62 }
 0x282   :  { %v362_v63 = vpop.xlane.xlu1 %361 }
 0x283   :  { %v367_v0 = vrot.slane %v362_v63, %v885_v22  ;;  %v371_v2 = vrot.slane %v362_v63, %v330_v45 }
 0x285   :  { %v374_v3 = vsub.f32 %v337_v52, %v367_v0  ;;  %v375_v4 = vsub.f32 %v338_v54, %v371_v2 }
 0x287   :  { %v376_v5 = vmul.f32 1.442695, %v374_v3  ;;  %v378_v6 = vmul.f32 1.442695, %v375_v4 }
 0x289   :  { %719 = vpow2.f32 %v376_v5 }
 0x28a   :  { %721 = vpow2.f32 %v378_v6 }
 0x296   :  { %v720_v7 = vpop.eup %719 }
 0x297   :  { %383 = vperm.xlu0 %714, %v720_v7   ;;  %v722_v8 = vpop.eup %721 }
 0x29b   :  { %386 = vperm.xlu0 %714, %v722_v8  }
 0x312   :  { %v384_v9 = vpop.permute.xlu0 %383 }
 0x313   :  { %v391_v11 = vrot.slane %v384_v9, %v351_v57 }
 0x316   :  { %v387_v10 = vpop.permute.xlu0 %386 }
 0x317   :  { %v395_v12 = vrot.slane %v387_v10, %v351_v57 }
 0x319   :  { %v396_v14 = vsel %vm357_vm6, %v395_v12, %v391_v11 }
 0x31a   :  { %v398_v15 = vsel %vm310_vm2, %v396_v14, 0.0 }
 0x31b   :  { %399 = vadd.xlane.f32.xlu0 %v398_v15 }
 0x3a4   :  { %v400_v16 = vpop.xlane.xlu0 %399 }
 0x3a5   :  { %v405_v17 = vrot.slane %v400_v16, %v885_v22  ;;  %v409_v18 = vrot.slane %v400_v16, %v330_v45 }
 0x3a7   :  { %723 = vrcp.f32 %v405_v17 }
 0x3a8   :  { %725 = vrcp.f32 %v409_v18 }
 0x3b4   :  { %v724_v20 = vpop.eup %723 }
 0x3b5   :  { %v726_v21 = vpop.eup %725  ;;  %v413_v23 = vmul.f32 %v724_v20, %v720_v7 }
 0x3b6   :  { %v415_v24 = vmul.f32 %v726_v21, %v722_v8 }
 0x3b7   :  { %419 = vperm.xlu1 %713, %v413_v23  }
 0x3b8   :  { %422 = vperm.xlu0 %714, %v415_v24  }
 0x432   :  { %v420_v25 = vpop.permute.xlu1 %419 }
 0x433   :  { %v423_v26 = vpop.permute.xlu0 %422  ;;  %v427_v27 = vrot.slane %v420_v25, %v351_v57 }
 0x434   :  { %v431_v28 = vrot.slane %v423_v26, %v351_v57 }
 0x436   :  { %v432_v29 = vsel %vm357_vm6, %v431_v28, %v427_v27 }
 0x437   :  { %v434_v30 = vsel %vm314_vm5, %v432_v29, 0.0 }
 0x438   :  { %v443_v22 = vrot.slane %v434_v30, %v882_v19  ;;  %435 = vst.msk [vmem:[#allocation2] sm:$0x3] %vm310_vm2, %v434_v30 }
 0x43a   :  { %v444_v31 = vcombine.high %v443_v22, %v443_v22  ;;  %v451_v32 = vrot.slane %v443_v22, %v882_v19 }
 0x43c   :  { %700 = vmatmul.mubr.msk.f32.vlgmr.msra.gmra.mxu1 %vm459_vm7, %v451_v32  ;;  %v458_v33 = vrot.slane %v444_v31, %v882_v19 }
 0x43d   :  { %703 = vmatpush3.msra.mxu1 %v873_v13  ;;  %704 = vmatprep.mubr.msk.f32.mxu1 %vm772_vm0, %v771_v1 }
 0x440   :  { %705 = vmatmul.mubr.msk.f32.vlgmr.msra.gmra.mxu1 %vm459_vm7, %v458_v33 }
 0x441   :  { %738 = shalt.err (!%p735_p4)
}
 0x442   :  { %620 = dma.vmem_to_hbm [thread:$0]  %s618_s22, 32, %s930_s6, [#allocation3]   ;;  %vm609_vm8 = vcmask 254976  }
 0x443   :  { %s776_s26 = smov [#allocation4]  }
 0x444   :  { %s627_s27 = sshll.u32 %s776_s26, 4  ;;  %s628_s27 = int_to_ptr.vmem [resolvable:$true] %s627_s27 }
 0x445   :  { %s747_s28 = scalar_lea.vmem %s628_s27, 32  ;;  %p752_p6 = scmp.lt.s32.totalorder %s628_s27, %s628_s27 }
 0x446   :  { %p748_p5 = scmp.ne.s32.totalorder %s628_s27, %s747_s28  ;;  %p753_p7 = scmp.lt.s32.totalorder %s747_s28, %s747_s28 }
 0x448   :  { %p754_p8 = por %p753_p7, %p752_p6 }
 0x44a   :  { %p755_p9 = pnand %p754_p8, %p748_p5 }
 0x4fc   :  { %v528_v13 = vpop.f32.mrf.mxu1 }
 0x4fe   :  { %v701_v34 = vpop.f32.mrf.mxu1 }
 0x500   :  { %v600_v1 = vpop.f32.mrf.mxu1 }
 0x501   :  { %v606_v19 = vrot.slane %v600_v1, 7 }
 0x502   :  { %v706_v35 = vpop.f32.mrf.mxu1 }
 0x503   :  { %v607_v36 = vsel %vm357_vm6, %v606_v19, %v528_v13 }
 0x504   :  { %610 = vst.msk [vmem:[#allocation4] sm:$0x3] %vm609_vm8, %v607_v36 }
 0x505   :  { %758 = shalt.err (!%p755_p9)
}
 0x506   :  { %630 = dma.vmem_to_hbm [thread:$0]  %s628_s27, 32, %s931_s7, [#allocation5]  }
 0x507   :  { %767 = dma.done.wait [#allocation3], 32  }
 0x508   :  { %768 = vsyncadd [#allocation3], 4294967264 }
 0x509   :  { %769 = dma.done.wait [#allocation5], 32  }
 0x50a   :  { %770 = vsyncadd [#allocation5], 4294967264 }
 0x50b   :  { %637 = vsyncpa [#allocation3], 1 }
 0x50c   :  { %638 = vsyncpa [#allocation5], 1 }

</bundles_post_ra>
